<compile_context>
chip_gen: v5e
topology: v5e:2x2
jax: 0.10.0
libtpu: 0.0.40
codegen_flags: <defaults>
</compile_context>

<pallas_src>
import jax
import jax.numpy as jnp
from jax.experimental import pallas as pl
from jax.experimental.pallas import tpu as pltpu


def _dir_attn_kernel(w_ref, x_ref, o_ref):
    # w_ref: (Nq, n)  structured weight (tiny, resident across the grid)
    # x_ref: (n, tm)  channel-major activation tile of one batch
    # o_ref: (Nq, tm) output tile: rows = (q, k, j, i), columns = spatial (lanes)
    o_ref[...] = jnp.dot(
        w_ref[...], x_ref[...], preferred_element_type=jnp.float32
    ).astype(o_ref.dtype)


def _build_structured_weight(qkv, c, d, q):
    """(q*3*4, c+4*d) weight that folds the 4 directions of the einsum into one matmul.

    Row index = (q_*3 + k)*4 + g with g = 2*j + i.
    Channel columns match NCHW x: [shared c | dir0 d | dir1 d | dir2 d | dir3 d];
    the shared block is replicated per direction, the d-blocks are block-diagonal.
    """
    # (2, q, 3, e): [j, q_, k, e]
    w_j = jnp.transpose(qkv, (3, 0, 2, 1))
    # direction g uses j = g // 2
    w_g = w_j[jnp.array([0, 0, 1, 1])]                       # (4, q, 3, e)
    shared = jnp.transpose(w_g[..., :c], (1, 2, 0, 3))       # (q, 3, 4, c)
    tail = w_g[..., c:]                                      # (4, q, 3, d)
    blocks = jnp.zeros((4, 4) + tail.shape[1:], qkv.dtype)   # (g, channel-block, q, 3, d)
    blocks = blocks.at[jnp.arange(4), jnp.arange(4)].set(tail)
    tail_t = jnp.transpose(blocks, (2, 3, 0, 1, 4))          # (q, 3, 4, 4, d)
    tail_t = tail_t.reshape(q, 3, 4, 4 * d)
    w_full = jnp.concatenate([shared, tail_t], axis=-1)      # (q, 3, 4, c + 4*d)
    return w_full.reshape(q * 3 * 4, c + 4 * d)


def _pick_spatial_tile(rc, n, nq, itemsize=4):
    """Largest lane tile that divides R*C, is a multiple of 128, and keeps the
    double-buffered (input + output) VMEM footprint within a v7x-safe budget."""
    budget = 24 * 1024 * 1024
    per_col = 2 * (n + nq) * itemsize            # double-buffered in + out per lane column
    cap = max(128, min(2048, (budget // per_col) // 128 * 128))
    if rc <= cap or rc % 128 != 0:
        return rc                                # full extent is always a legal block
    t = cap
    while rc % t != 0:
        t -= 128
    return t


def directional_attention(x, qkv, c, d, q):
    """Pallas equivalent of DirectionalAttentionLayer.forward."""
    B, n, R, C = x.shape
    assert n == c + 4 * d, "Incorrect input shape"
    e = c + d
    assert qkv.shape == (q, e, 3, 2)

    rc = R * C
    nq = q * 3 * 4
    compute_dtype = x.dtype                       # bf16 in -> bf16 MXU operands
    out_dtype = jnp.promote_types(x.dtype, qkv.dtype)

    w_t = _build_structured_weight(qkv, c, d, q).astype(compute_dtype)   # (nq, n)
    x3 = x.reshape(B, n, rc)                                             # free (contiguous)

    tm = _pick_spatial_tile(rc, n, nq)
    grid = (B, rc // tm)

    out_itemsize = jnp.dtype(out_dtype).itemsize
    cost = pl.CostEstimate(
        flops=2 * B * rc * n * nq,
        transcendentals=0,
        bytes_accessed=(x3.size * x3.dtype.itemsize
                        + w_t.size * w_t.dtype.itemsize
                        + B * nq * rc * out_itemsize),
    )

    y = pl.pallas_call(
        _dir_attn_kernel,
        out_shape=jax.ShapeDtypeStruct((B, nq, rc), out_dtype),
        grid=grid,
        in_specs=[
            pl.BlockSpec((nq, n), lambda b, s: (0, 0)),           # resident weight
            pl.BlockSpec((None, n, tm), lambda b, s: (b, 0, s)),  # one batch / spatial tile
        ],
        out_specs=pl.BlockSpec((None, nq, tm), lambda b, s: (b, 0, s)),
        compiler_params=pltpu.CompilerParams(
            dimension_semantics=("parallel", "parallel"),
            vmem_limit_bytes=32 * 1024 * 1024,
        ),
        cost_estimate=cost,
    )(w_t, x3)

    # rows are (q, k, j, i): one fused XLA transpose restores the module's layout.
    out = y.reshape(B, q, 3, 2, 2, R, C)
    return jnp.transpose(out, (0, 1, 5, 6, 2, 3, 4))


def _reference(x, qkv, c, d, q):
    """Pure-JAX transcription of the PyTorch forward, for verification."""
    first = x[:, :c]
    second = x[:, c:c + d]
    third = x[:, c + d:c + 2 * d]
    fourth = x[:, c + 2 * d:c + 3 * d]
    fifth = x[:, c + 3 * d:]
    hor = jnp.concatenate([first, second], axis=1)
    ver = jnp.concatenate([first, third], axis=1)
    dia = jnp.concatenate([first, fourth], axis=1)
    ant = jnp.concatenate([first, fifth], axis=1)
    hor_ver = jnp.stack([hor, ver], axis=-1)
    dia_ant = jnp.stack([dia, ant], axis=-1)
    all_dir = jnp.stack([hor_ver, dia_ant], axis=-2)   # (B, e, R, C, 2, 2)
    return jnp.einsum('qekj,bercji->bqrckji', qkv, all_dir)


if __name__ == "__main__":
    batch, c, d, q, b = 2, 4, 4, 8, 16   # n = c + 4d = 20, spatial = 16x16
    e = c + d

    key = jax.random.PRNGKey(0)
    kx, kw = jax.random.split(key)
    x = jax.random.normal(kx, (batch, c + 4 * d, b, b), dtype=jnp.float32)
    qkv = jax.random.normal(kw, (q, e, 3, 2), dtype=jnp.float32)

    # f32 path (default, semantics-preserving)
    out = jax.block_until_ready(directional_attention(x, qkv, c, d, q))
    ref = _reference(x, qkv, c, d, q)
    assert out.shape == (batch, q, b, b, 3, 2, 2), out.shape
    assert jnp.allclose(out, ref, atol=1e-3, rtol=1e-3), \
        float(jnp.max(jnp.abs(out - ref)))

    # bf16-activation path (native MXU bf16 with f32 accumulation)
    x_bf = x.astype(jnp.bfloat16)
    out_bf = jax.block_until_ready(directional_attention(x_bf, qkv, c, d, q))
    ref_bf = _reference(x_bf.astype(jnp.float32),
                        qkv.astype(jnp.bfloat16).astype(jnp.float32), c, d, q)
    assert out_bf.shape == (batch, q, b, b, 3, 2, 2), out_bf.shape
    assert jnp.allclose(out_bf, ref_bf, atol=5e-2, rtol=5e-2), \
        float(jnp.max(jnp.abs(out_bf - ref_bf)))

    print("KERNEL_OK")
</pallas_src>

<mosaic_0001>
module attributes {stable_mosaic.version = 11 : i64} {
  func.func @_dir_attn_kernel(%arg0: i32, %arg1: i32, %arg2: memref<96x20xf32, #tpu.memory_space<vmem>>, %arg3: memref<1x20x256xf32, #tpu.memory_space<vmem>>, %arg4: memref<1x96x256xf32, #tpu.memory_space<vmem>>) attributes {dimension_semantics = [#tpu.dimension_semantics<parallel>, #tpu.dimension_semantics<parallel>], iteration_bounds = array<i64: 2, 1>, scalar_prefetch = 0 : i64, scratch_operands = 0 : i64, tpu.core_type = #tpu.core_type<tc>, window_params = [{pipeline_mode = #tpu.pipeline_mode<synchronous>, transform_indices = @transform_0, window_bounds = array<i64: 96, 20>}, {transform_indices = @transform_1, window_bounds = array<i64: 1, 20, 256>}, {transform_indices = @transform_2, window_bounds = array<i64: 1, 96, 256>}]} {
    %c0 = arith.constant 0 : index
    %c0_0 = arith.constant 0 : index
    %0 = vector.load %arg2[%c0, %c0_0] : memref<96x20xf32, #tpu.memory_space<vmem>>, vector<96x20xf32>
    %c0_1 = arith.constant 0 : index
    %c0_2 = arith.constant 0 : index
    %c0_3 = arith.constant 0 : index
    %1 = vector.load %arg3[%c0_1, %c0_2, %c0_3] : memref<1x20x256xf32, #tpu.memory_space<vmem>>, vector<1x20x256xf32>
    %2 = vector.shape_cast %1 : vector<1x20x256xf32> to vector<20x256xf32>
    %cst = arith.constant dense<0.000000e+00> : vector<96x256xf32>
    %3 = tpu.matmul %0, %2, %cst {dimension_numbers = #tpu.dot_dimension_numbers<[1], [0], [0], [1], [0, 0, 1, 1], [], []>} : vector<96x20xf32>, vector<20x256xf32>, vector<96x256xf32> -> vector<96x256xf32>
    %c0_4 = arith.constant 0 : index
    %c0_5 = arith.constant 0 : index
    %c0_6 = arith.constant 0 : index
    %4 = vector.load %arg4[%c0_4, %c0_5, %c0_6] : memref<1x96x256xf32, #tpu.memory_space<vmem>>, vector<1x96x256xf32>
    %5 = vector.shape_cast %4 : vector<1x96x256xf32> to vector<96x256xf32>
    %6 = vector.shape_cast %3 : vector<96x256xf32> to vector<1x96x256xf32>
    tpu.vector_store %arg4[%c0_4, %c0_5, %c0_6], %6 {strides = array<i32>} : memref<1x96x256xf32, #tpu.memory_space<vmem>>, vector<1x96x256xf32>,
    return
  }
  func.func @transform_0(%arg0: i32, %arg1: i32) -> (i32, i32) {
    %c0_i32 = arith.constant 0 : i32
    %c0_i32_0 = arith.constant 0 : i32
    %c0_i32_1 = arith.constant 0 : i32
    return %c0_i32, %c0_i32_0 : i32, i32
  }
  func.func @transform_1(%arg0: i32, %arg1: i32) -> (i32, i32, i32) {
    %c0_i32 = arith.constant 0 : i32
    %c0_i32_0 = arith.constant 0 : i32
    return %arg0, %c0_i32, %arg1 : i32, i32, i32
  }
  func.func @transform_2(%arg0: i32, %arg1: i32) -> (i32, i32, i32) {
    %c0_i32 = arith.constant 0 : i32
    %c0_i32_0 = arith.constant 0 : i32
    return %arg0, %c0_i32, %arg1 : i32, i32, i32
  }
}

</mosaic_0001>

<bundles_post_ra>
// kernel: tpu_custom_call.1
= control target key start
LH: loop header
LB: loop body
LE: loop exit
PB: predicated region body
PF: predicated region fallthrough
CT: control target
= control target key end

     0   :  { %7 = vsyncpa [#allocation3], 0  ;;  %s848_s0 = inlined_call_operand.vmem [shape: f32[96,20], index: 0, kind: input, shape index: {}]   ;;  %s849_s1 = inlined_call_operand.vmem [shape: f32[2,20,256], index: 1, kind: input, shape index: {}]   ;;  %s850_s2 = inlined_call_operand.hbm [shape: f32[2,96,256], index: 2, kind: output, shape index: {}]  }
   0x1   :  { %9 = vsyncpa [#allocation3 + $0x1], 0  ;;  %s660_s9 = smov 0   ;;  %s662_s10 = smov 0  }
   0x2   :  { %s664_s11 = smov 0   ;;  %s666_s12 = smov 0  }
   0x3   :  { %s668_s13 = smov 0   ;;  %s670_s14 = smov 0  }
   0x4 LB: > { %s462_s15 = sadd.s32 4294967295, %s641_s14   ;;  %s463_s16 = sadd.s32 4294967294, %s641_s14   ;;  %s641_s14 = sphi %s670_s14, %s15_s14   ;;  %s637_s13 = sphi %s668_s13, %s857_s13   ;;  %s633_s12 = sphi %s666_s12, %s856_s12   ;;  %s629_s11 = sphi %s664_s11, %s855_s11   ;;  %s625_s10 = sphi %s662_s10, %s854_s10   ;;  %s621_s9 = sphi %s660_s9, %s853_s9  }
   0x5   : > { %s27_s17 = sadd.s32 1, %s637_s13  ;;  %s85_s18 = sadd.s32 1, %s629_s11 }
   0x6   : > { %p29_p0 = scmp.ge.s32.totalorder %s27_s17, 2  ;;  %p95_p1 = scmp.ne.s32.totalorder %s629_s11, %s625_s10 }
   0x7   : > { %p96_p2 = scmp.eq.s32.totalorder %s462_s15, 1  ;;  %p101_p3 = scmp.ne.s32.totalorder %s625_s10, %s621_s9 }
   0x8   : > { %s859_s17 = smov (%p29_p0, %s27_s17), 0  ;;  %p102_p5 = scmp.eq.s32.totalorder %s463_s16, 1 }
   0x9   : > { %p700_p4 = por %p96_p2, %p95_p1  ;;  %s80_s20 = ssub.s32 %s637_s13, %s859_s17 }
   0xa   : > { %p466_p6 = scmp.ge.s32.totalorder %s641_s14, 1  ;;  %p83_p7 = scmp.eq.s32.totalorder %s80_s20, 0 }
   0xb   : > { %p707_p8 = por %p102_p5, %p101_p3  ;;  %p136_p9 = scmp.lt.s32.totalorder %s641_s14, 3 }
   0xc   : > { %s713_s22 = scalar_select %p83_p7, %s629_s11, %s85_s18  }
   0xd   : > { %p137_p10 = pnand %p466_p6, %p136_p9 }
   0xe   : > { %p163_p11 = scmp.lt.s32.totalorder (!%p137_p10), %s633_s12, 1  ;;  %s159_s6 = sand.u32 (!%p137_p10), 1, %s625_s10  }
   0xf   : > { %140 = sbr.rel (%p137_p10) target bundleno = 208 (0xd0), region = 28  ;;  %s583_s29 = scalar_lea.hbm (!%p137_p10), %s850_s2, 384 }
  0x10   : > { %s503_s7 = smul.u32 (!%p137_p10), 192, %s159_s6 }
  0x11   : > { %s505_s15 = smul.u32 (!%p137_p10), 192, %s633_s12 }
  0x12   : > { %s783_s8 = scalar_lea.vmem (!%p137_p10), [#allocation2], %s503_s7 }
  0x13   : > { %s379_s20 = scalar_lea.hbm (!%p137_p10), %s850_s2, %s505_s15 }
  0x14   : > { %s164_s23 = scalar_select %p163_p11, %s633_s12, 1  ;;  %vm228_vm0 = vcmask 1043456   ;;  %v179_v6 = vld [vmem:[%s848_s0 + $0x30] sm:$0xff]  ;;  %vm191_vm1 = vcmask 162816   ;;  %v173_v7 = vld [vmem:[%s848_s0] sm:$0xff]  ;;  %v180_v8 = vld [vmem:[%s848_s0 + $0x38] sm:$0xff] }
  0x15   : > { %v174_v9 = vld [vmem:[%s848_s0 + $0x8] sm:$0xff]  ;;  %v181_v10 = vld [vmem:[%s848_s0 + $0x40] sm:$0xff]  ;;  %v175_v11 = vld [vmem:[%s848_s0 + $0x10] sm:$0xff]  ;;  %s366_s12 = scalar_lea.sflag [#allocation3], %s159_s6 }
  0x16   : > { %s504_s24 = smul.u32 48, %s164_s23  ;;  %v182_v12 = vld [vmem:[%s848_s0 + $0x48] sm:$0xff]  ;;  %v176_v13 = vld [vmem:[%s848_s0 + $0x18] sm:$0xff]  ;;  %v183_v14 = vld [vmem:[%s848_s0 + $0x50] sm:$0xff]  ;;  %s380_s23 = sshll.u32 %s783_s8, 4  ;;  %s381_s23 = int_to_ptr.vmem [resolvable:$true] %s380_s23 }
  0x17   : > { %v177_v15 = vld [vmem:[%s848_s0 + $0x20] sm:$0xff]  ;;  %v184_v16 = vld [vmem:[%s848_s0 + $0x58] sm:$0xff]  ;;  %v178_v17 = vld [vmem:[%s848_s0 + $0x28] sm:$0xff] }
  0x18   : > { %s170_s27 = scalar_lea.vmem %s849_s1, %s504_s24  ;;  %s382_s24 = sshll.u32 %s379_s20, 4  ;;  %s383_s24 = int_to_ptr.hbm [resolvable:$true] %s382_s24 }
  0x19   : > { %v189_v0 = vld [vmem:[%s170_s27 + $0x20] sm:$0xf]  ;;  %v190_v1 = vld [vmem:[%s170_s27 + $0x28] sm:$0xf]  ;;  %v187_v2 = vld [vmem:[%s170_s27 + $0x10] sm:$0xff]  ;;  %s577_s25 = sshra.s32 %s383_s24, 4  ;;  %s578_s25 = int_to_ptr.hbm [resolvable:$true] %s577_s25 }
  0x1a   : > { %497 = vmatpush.msk.msra.mxu2 %vm228_vm0, %v189_v0  ;;  %500 = vmatpush.msk.msra.mxu3 %vm228_vm0, %v190_v1  ;;  %v188_v3 = vld [vmem:[%s170_s27 + $0x18] sm:$0xff]  ;;  %v185_v4 = vld [vmem:[%s170_s27] sm:$0xff]  ;;  %v186_v5 = vld [vmem:[%s170_s27 + $0x8] sm:$0xff]  ;;  %s579_s26 = scalar_lea.hbm %s578_s25, 192  ;;  %p584_p1 = scmp.lt.s32.totalorder %s578_s25, %s850_s2 }
  0x1b   : > { %468 = vmatpush.msk.msra.mxu0 %vm228_vm0, %v189_v0  ;;  %481 = vmatpush.msk.msra.mxu1 %vm228_vm0, %v190_v1  ;;  %p580_p12 = scmp.ne.s32.totalorder %s578_s25, %s579_s26  ;;  %p585_p2 = scmp.lt.s32.totalorder %s583_s29, %s579_s26 }
  0x1c   : > { %498 = vmatpush.msra.mxu2 %v187_v2  ;;  %501 = vmatpush.msra.mxu3 %v188_v3 }
  0x1d   : > { %249 = vmatpush.msra.mxu0 %v187_v2  ;;  %302 = vmatpush.msra.mxu1 %v188_v3  ;;  %p581_p13 = pnand %p580_p12, %p700_p4  ;;  %p586_p3 = por %p585_p2, %p584_p1 }
  0x1e   : > { %499 = vmatpush.msra.mxu2 %v185_v4  ;;  %502 = vmatpush.msra.mxu3 %v186_v5 }
  0x1f   : > { %475 = vmatmul.msk.f32.vlgmr.msra.gmra.mxu2 %vm191_vm1, %v179_v6  ;;  %488 = vmatmul.msk.f32.vlgmr.msra.gmra.mxu3 %vm191_vm1, %v179_v6  ;;  %p582_p0 = pneg %p581_p13 }
  0x20   : > { %250 = vmatpush.msra.mxu0 %v185_v4  ;;  %303 = vmatpush.msra.mxu1 %v186_v5 }
  0x21   : > { %469 = vmatmul.msk.f32.vlgmr.msra.gmra.mxu0 %vm191_vm1, %v173_v7  ;;  %482 = vmatmul.msk.f32.vlgmr.msra.gmra.mxu1 %vm191_vm1, %v173_v7  ;;  %p587_p5 = pnand %p586_p3, %p582_p0 }
  0x27   : > { %476 = vmatmul.msk.f32.gmra.mxu2 %vm191_vm1, %v180_v8  ;;  %489 = vmatmul.msk.f32.gmra.mxu3 %vm191_vm1, %v180_v8 }
  0x29   : > { %470 = vmatmul.msk.f32.gmra.mxu0 %vm191_vm1, %v174_v9  ;;  %483 = vmatmul.msk.f32.gmra.mxu1 %vm191_vm1, %v174_v9 }
  0x2f   : > { %477 = vmatmul.msk.f32.gmra.mxu2 %vm191_vm1, %v181_v10  ;;  %490 = vmatmul.msk.f32.gmra.mxu3 %vm191_vm1, %v181_v10 }
  0x31   : > { %471 = vmatmul.msk.f32.gmra.mxu0 %vm191_vm1, %v175_v11  ;;  %484 = vmatmul.msk.f32.gmra.mxu1 %vm191_vm1, %v175_v11 }
  0x37   : > { %478 = vmatmul.msk.f32.gmra.mxu2 %vm191_vm1, %v182_v12  ;;  %491 = vmatmul.msk.f32.gmra.mxu3 %vm191_vm1, %v182_v12 }
  0x39   : > { %472 = vmatmul.msk.f32.gmra.mxu0 %vm191_vm1, %v176_v13  ;;  %485 = vmatmul.msk.f32.gmra.mxu1 %vm191_vm1, %v176_v13 }
  0x3f   : > { %479 = vmatmul.msk.f32.gmra.mxu2 %vm191_vm1, %v183_v14  ;;  %492 = vmatmul.msk.f32.gmra.mxu3 %vm191_vm1, %v183_v14 }
  0x41   : > { %473 = vmatmul.msk.f32.gmra.mxu0 %vm191_vm1, %v177_v15  ;;  %486 = vmatmul.msk.f32.gmra.mxu1 %vm191_vm1, %v177_v15 }
  0x47   : > { %480 = vmatmul.msk.f32.gmra.mxu2 %vm191_vm1, %v184_v16  ;;  %493 = vmatmul.msk.f32.gmra.mxu3 %vm191_vm1, %v184_v16 }
  0x49   : > { %474 = vmatmul.msk.f32.gmra.mxu0 %vm191_vm1, %v178_v17  ;;  %487 = vmatmul.msk.f32.gmra.mxu1 %vm191_vm1, %v178_v17 }
  0x9e   : > { %v252_v18 = vpop.f32.mrf.mxu0  ;;  %v305_v19 = vpop.f32.mrf.mxu1 }
  0x9f   : > { %341 = vst [vmem:[%s783_s8] sm:$0xff] %v252_v18 }
  0xa0   : > { %342 = vst [vmem:[%s783_s8 + $0x8] sm:$0xff] %v305_v19 }
  0xa2   : > { %v270_v20 = vpop.f32.mrf.mxu2  ;;  %v323_v21 = vpop.f32.mrf.mxu3 }
  0xa3   : > { %353 = vst [vmem:[%s783_s8 + $0x60] sm:$0xff] %v270_v20 }
  0xa4   : > { %354 = vst [vmem:[%s783_s8 + $0x68] sm:$0xff] %v323_v21 }
  0xa6   : > { %v255_v22 = vpop.f32.mrf.mxu0  ;;  %v308_v23 = vpop.f32.mrf.mxu1 }
  0xa7   : > { %343 = vst [vmem:[%s783_s8 + $0x10] sm:$0xff] %v255_v22 }
  0xa8   : > { %344 = vst [vmem:[%s783_s8 + $0x18] sm:$0xff] %v308_v23 }
  0xaa   : > { %v273_v24 = vpop.f32.mrf.mxu2  ;;  %v326_v25 = vpop.f32.mrf.mxu3 }
  0xab   : > { %355 = vst [vmem:[%s783_s8 + $0x70] sm:$0xff] %v273_v24 }
  0xac   : > { %356 = vst [vmem:[%s783_s8 + $0x78] sm:$0xff] %v326_v25 }
  0xae   : > { %v258_v26 = vpop.f32.mrf.mxu0  ;;  %v311_v27 = vpop.f32.mrf.mxu1 }
  0xaf   : > { %345 = vst [vmem:[%s783_s8 + $0x20] sm:$0xff] %v258_v26 }
  0xb0   : > { %346 = vst [vmem:[%s783_s8 + $0x28] sm:$0xff] %v311_v27 }
  0xb2   : > { %v276_v28 = vpop.f32.mrf.mxu2  ;;  %v329_v29 = vpop.f32.mrf.mxu3 }
  0xb3   : > { %357 = vst [vmem:[%s783_s8 + $0x80] sm:$0xff] %v276_v28 }
  0xb4   : > { %358 = vst [vmem:[%s783_s8 + $0x88] sm:$0xff] %v329_v29 }
  0xb6   : > { %v261_v30 = vpop.f32.mrf.mxu0  ;;  %v314_v31 = vpop.f32.mrf.mxu1 }
  0xb7   : > { %347 = vst [vmem:[%s783_s8 + $0x30] sm:$0xff] %v261_v30 }
  0xb8   : > { %348 = vst [vmem:[%s783_s8 + $0x38] sm:$0xff] %v314_v31 }
  0xba   : > { %v279_v32 = vpop.f32.mrf.mxu2  ;;  %v332_v33 = vpop.f32.mrf.mxu3 }
  0xbb   : > { %359 = vst [vmem:[%s783_s8 + $0x90] sm:$0xff] %v279_v32 }
  0xbc   : > { %360 = vst [vmem:[%s783_s8 + $0x98] sm:$0xff] %v332_v33 }
  0xbe   : > { %v264_v34 = vpop.f32.mrf.mxu0  ;;  %v317_v35 = vpop.f32.mrf.mxu1 }
  0xbf   : > { %349 = vst [vmem:[%s783_s8 + $0x40] sm:$0xff] %v264_v34 }
  0xc0   : > { %350 = vst [vmem:[%s783_s8 + $0x48] sm:$0xff] %v317_v35 }
  0xc2   : > { %v282_v36 = vpop.f32.mrf.mxu2  ;;  %v335_v37 = vpop.f32.mrf.mxu3 }
  0xc3   : > { %361 = vst [vmem:[%s783_s8 + $0xa0] sm:$0xff] %v282_v36 }
  0xc4   : > { %362 = vst [vmem:[%s783_s8 + $0xa8] sm:$0xff] %v335_v37 }
  0xc6   : > { %v267_v38 = vpop.f32.mrf.mxu0  ;;  %v320_v39 = vpop.f32.mrf.mxu1 }
  0xc7   : > { %351 = vst [vmem:[%s783_s8 + $0x50] sm:$0xff] %v267_v38 }
  0xc8   : > { %352 = vst [vmem:[%s783_s8 + $0x58] sm:$0xff] %v320_v39 }
  0xca   : > { %v285_v40 = vpop.f32.mrf.mxu2  ;;  %v338_v41 = vpop.f32.mrf.mxu3 }
  0xcb   : > { %363 = vst [vmem:[%s783_s8 + $0xb0] sm:$0xff] %v285_v40 }
  0xcc   : > { %364 = vst [vmem:[%s783_s8 + $0xb8] sm:$0xff] %v338_v41 }
  0xcd   : > { %590 = shalt.err (!%p587_p5)
}
  0xce   : > { %s643_s4 = smov 256   ;;  %s644_s5 = smov 16  }
  0xcf   : > { %506 = dma.vmem_to_hbm [thread:$0]  (%p700_p4), %s381_s23, 3072, %s383_s24, %s366_s12, %s643_s4, %s643_s4, %s644_s5  }
  0xd0 PF: > { %p512_p6 = scmp.ge.s32.totalorder %s641_s14, 2  ;;  %s397_s6 = sand.u32 1, %s621_s9  }
  0xd1   : > { %s398_s7 = scalar_lea.sflag [#allocation3], %s397_s6 }
  0xd2   : > { %p509_p7 = pnand %p512_p6, %p707_p8 }
  0xd4   : > { %p510_p9 = pneg %p509_p7 }
  0xd6   : > { %616 = dma.done.wait (%p510_p9), %s398_s7, 3072  }
  0xd7   : > { %618 = vsyncadd (%p510_p9), %s398_s7, 4294964224  ;;  %s15_s14 = sadd.s32 1, %s641_s14   ;;  %s853_s9 = smov %s625_s10 }
  0xd8   : > { %p12_p10 = scmp.ge.s32.totalorder %s15_s14, 4   ;;  %s854_s10 = smov %s629_s11 }
  0xd9   : > { %s855_s11 = smov %s713_s22  ;;  %s856_s12 = smov %s637_s13 }
  0xda   : > { %s857_s13 = smov %s859_s17  ;;  %14 = sbr.rel (!%p12_p10) target bundleno = 4 (0x4), region = 63 }
  0xdf   :  { %404 = vsyncpa [#allocation3], 1 }
  0xe0   :  { %406 = vsyncpa [#allocation3 + $0x1], 1 }

</bundles_post_ra>
